<compile_context>
chip_gen: v7x
topology: tpu7x:2x2x1
jax: 0.10.0
libtpu: 0.0.40
codegen_flags: <defaults>
</compile_context>

<pallas_src>
import functools

import jax
import jax.numpy as jnp
from jax.experimental import pallas as pl
from jax.experimental.pallas import tpu as pltpu


def _round_up(x, m):
    return ((x + m - 1) // m) * m


def _pad_to(a, shape):
    """Zero-pad array `a` up to `shape` (no-op if already that shape)."""
    pads = [(0, t - s) for s, t in zip(a.shape, shape)]
    if all(p == (0, 0) for p in pads):
        return a
    return jnp.pad(a, pads)


def _disc_mlp_kernel(x_ref, w1_ref, b1_ref, w2_ref, b2_ref, w3_ref, b3_ref,
                     out_ref, *, neg_slope):
    """Whole-MLP hot path: two hidden Linear+LeakyReLU layers + final Linear.

    Matmuls run on the MXU in the dtype of the weight refs (f32 or bf16);
    accumulation, bias add and LeakyReLU are always f32.
    """
    mxu_dtype = w1_ref.dtype
    x = x_ref[...]

    # Layer 1: Linear + LeakyReLU(0.2)   (Dropout == identity at inference)
    h = jnp.dot(x, w1_ref[...], preferred_element_type=jnp.float32) + b1_ref[...]
    h = jnp.where(h > 0, h, neg_slope * h)

    # Layer 2: Linear + LeakyReLU(0.2)
    h = jnp.dot(h.astype(mxu_dtype), w2_ref[...],
                preferred_element_type=jnp.float32) + b2_ref[...]
    h = jnp.where(h > 0, h, neg_slope * h)

    # Output layer: Linear(h2, 1), lane-padded to 128 output columns.
    out = jnp.dot(h.astype(mxu_dtype), w3_ref[...],
                  preferred_element_type=jnp.float32) + b3_ref[...]
    out_ref[...] = out.astype(out_ref.dtype)


def discriminator_forward(input_, params, *, pac, tile_b=256, use_bf16=False):
    """Apply the Discriminator. input_: (N, input_dim), N % pac == 0.

    tile_b: batch tile (rows of the packed batch per grid step). 128 saturates
            the v5e MXU; 256 is a good default for v6e/v7x. Automatically
            shrunk for small batches.
    use_bf16: feed bf16 operands to the MXU (recommended on v6e/v7x);
              accumulation and elementwise math stay f32.
    """
    n, input_dim = input_.shape
    assert n % pac == 0, "batch size must be divisible by pac"
    pacdim = input_dim * pac

    # Pack pac consecutive samples into one row (same as .view(-1, pacdim)).
    x = input_.reshape(n // pac, pacdim)
    b = x.shape[0]

    w1, b1, w2, b2, w3, b3 = params
    h1, h2 = w1.shape[1], w2.shape[1]

    # Lane-pad hidden and output dims to multiples of 128. Zero padding keeps
    # results exact: padded hidden columns get 0 pre-activation, LeakyReLU(0)=0,
    # and padded output columns are sliced off below.
    h1p = _round_up(h1, 128)
    h2p = _round_up(h2, 128)
    outp = 128

    w1p = _pad_to(w1, (pacdim, h1p))
    b1p = _pad_to(b1, (1, h1p))
    w2p = _pad_to(w2, (h1p, h2p))
    b2p = _pad_to(b2, (1, h2p))
    w3p = _pad_to(w3, (h2p, outp))
    b3p = _pad_to(b3, (1, outp))          # real bias lives in column 0

    if use_bf16:
        x = x.astype(jnp.bfloat16)
        w1p = w1p.astype(jnp.bfloat16)
        w2p = w2p.astype(jnp.bfloat16)
        w3p = w3p.astype(jnp.bfloat16)
        # biases stay f32: added after the f32-accumulated matmul.

    # Batch tile: multiple of 8 sublanes, no larger than needed for this batch.
    tile_b = _round_up(tile_b, 8)
    tb = min(tile_b, _round_up(b, 8))
    grid = (pl.cdiv(b, tb),)              # partial last block is clipped.

    itemsize = lambda a: a.size * a.dtype.itemsize
    cost = pl.CostEstimate(
        flops=2 * b * (pacdim * h1p + h1p * h2p + h2p * outp),
        transcendentals=0,
        bytes_accessed=(itemsize(x) + itemsize(w1p) + itemsize(b1p)
                        + itemsize(w2p) + itemsize(b2p) + itemsize(w3p)
                        + itemsize(b3p) + b * outp * 4),
    )

    out = pl.pallas_call(
        functools.partial(_disc_mlp_kernel, neg_slope=0.2),
        out_shape=jax.ShapeDtypeStruct((b, outp), jnp.float32),
        grid_spec=pltpu.PrefetchScalarGridSpec(
            num_scalar_prefetch=0,
            grid=grid,
            in_specs=[
                pl.BlockSpec((tb, pacdim), lambda i: (i, 0)),   # x tile
                pl.BlockSpec((pacdim, h1p), lambda i: (0, 0)),  # W1
                pl.BlockSpec((1, h1p), lambda i: (0, 0)),       # b1
                pl.BlockSpec((h1p, h2p), lambda i: (0, 0)),     # W2
                pl.BlockSpec((1, h2p), lambda i: (0, 0)),       # b2
                pl.BlockSpec((h2p, outp), lambda i: (0, 0)),    # W3 (lane-padded)
                pl.BlockSpec((1, outp), lambda i: (0, 0)),      # b3 (lane-padded)
            ],
            out_specs=pl.BlockSpec((tb, outp), lambda i: (i, 0)),
        ),
        compiler_params=pltpu.CompilerParams(
            dimension_semantics=("parallel",),      # shards across v7x's 2 TCs
            vmem_limit_bytes=32 * 1024 * 1024,
        ),
        cost_estimate=cost,
    )(x, w1p, b1p, w2p, b2p, w3p, b3p)

    # Only column 0 is the real logit; padded lanes are discarded.
    return out[:, :1]


def init_params(key, input_dim, discriminator_dim, pac):
    """Deterministic parameter init matching the module's shapes.

    PyTorch Linear stores weight as (out, in); we store the transpose
    (in, out) so the kernel computes x @ W directly.
    """
    dims = [input_dim * pac] + list(discriminator_dim) + [1]
    params = []
    for i in range(len(dims) - 1):
        d_in, d_out = dims[i], dims[i + 1]
        key, wk, bk = jax.random.split(key, 3)
        bound = 1.0 / jnp.sqrt(d_in)
        w = jax.random.uniform(wk, (d_in, d_out), jnp.float32, -bound, bound)
        b = jax.random.uniform(bk, (1, d_out), jnp.float32, -bound, bound)
        params += [w, b]
    return tuple(params)


def reference_forward(input_, params, *, pac, use_bf16=False):
    """Pure-JAX reference of the same forward pass (for sanity checking)."""
    x = input_.reshape(input_.shape[0] // pac, -1)
    w1, b1, w2, b2, w3, b3 = params

    def mm(a, w):
        if use_bf16:
            a = a.astype(jnp.bfloat16)
            w = w.astype(jnp.bfloat16)
        return jnp.dot(a, w, preferred_element_type=jnp.float32)

    h = mm(x, w1) + b1
    h = jnp.where(h > 0, h, 0.2 * h)
    h = mm(h, w2) + b2
    h = jnp.where(h > 0, h, 0.2 * h)
    return mm(h, w3) + b3


if __name__ == "__main__":
    key = jax.random.PRNGKey(0)

    # --- Small, discriminator-consistent shapes (exact f32 path) ----------
    input_dim = 16
    discriminator_dim = (32, 32)
    pac = 4
    batch = 8                     # N % pac == 0  ->  packed batch = 2

    key, pkey, xkey = jax.random.split(key, 3)
    params = init_params(pkey, input_dim, discriminator_dim, pac)
    x = jax.random.normal(xkey, (batch, input_dim), jnp.float32)

    out = jax.block_until_ready(discriminator_forward(x, params, pac=pac))
    ref = reference_forward(x, params, pac=pac)
    assert out.shape == (batch // pac, 1), out.shape
    assert jnp.allclose(out, ref, atol=1e-4, rtol=1e-4), (out, ref)

    # --- Larger shapes: exercises 128-row tiles, ragged last tile, padding -
    input_dim2 = 53
    discriminator_dim2 = (256, 256)
    pac2 = 10
    batch2 = 2000                 # packed batch = 200 -> 2 grid steps @ tb=128

    key, pkey2, xkey2 = jax.random.split(key, 3)
    params2 = init_params(pkey2, input_dim2, discriminator_dim2, pac2)
    x2 = jax.random.normal(xkey2, (batch2, input_dim2), jnp.float32)

    out2 = jax.block_until_ready(
        discriminator_forward(x2, params2, pac=pac2, tile_b=128))
    ref2 = reference_forward(x2, params2, pac=pac2)
    assert out2.shape == (batch2 // pac2, 1), out2.shape
    assert jnp.allclose(out2, ref2, atol=1e-2, rtol=1e-2)

    # bf16-on-MXU path (v6e/v7x recommendation), checked against a bf16 ref.
    out2_bf = jax.block_until_ready(
        discriminator_forward(x2, params2, pac=pac2, tile_b=128, use_bf16=True))
    ref2_bf = reference_forward(x2, params2, pac=pac2, use_bf16=True)
    assert jnp.allclose(out2_bf, ref2_bf, atol=2e-2, rtol=2e-2)

    print("KERNEL_OK")
</pallas_src>

<mosaic_0001>
module attributes {stable_mosaic.version = 11 : i64} {
  func.func @_disc_mlp_kernel(%arg0: i32, %arg1: memref<8x64xf32, #tpu.memory_space<vmem>>, %arg2: memref<64x128xf32, #tpu.memory_space<vmem>>, %arg3: memref<1x128xf32, #tpu.memory_space<vmem>>, %arg4: memref<128x128xf32, #tpu.memory_space<vmem>>, %arg5: memref<1x128xf32, #tpu.memory_space<vmem>>, %arg6: memref<128x128xf32, #tpu.memory_space<vmem>>, %arg7: memref<1x128xf32, #tpu.memory_space<vmem>>, %arg8: memref<8x128xf32, #tpu.memory_space<vmem>>) attributes {dimension_semantics = [#tpu.dimension_semantics<parallel>], iteration_bounds = array<i64: 1>, scalar_prefetch = 0 : i64, scratch_operands = 0 : i64, tpu.core_type = #tpu.core_type<tc>, window_params = [{transform_indices = @transform_0, window_bounds = array<i64: 8, 64>}, {pipeline_mode = #tpu.pipeline_mode<synchronous>, transform_indices = @transform_1, window_bounds = array<i64: 64, 128>}, {pipeline_mode = #tpu.pipeline_mode<synchronous>, transform_indices = @transform_2, window_bounds = array<i64: 1, 128>}, {pipeline_mode = #tpu.pipeline_mode<synchronous>, transform_indices = @transform_3, window_bounds = array<i64: 128, 128>}, {pipeline_mode = #tpu.pipeline_mode<synchronous>, transform_indices = @transform_4, window_bounds = array<i64: 1, 128>}, {pipeline_mode = #tpu.pipeline_mode<synchronous>, transform_indices = @transform_5, window_bounds = array<i64: 128, 128>}, {pipeline_mode = #tpu.pipeline_mode<synchronous>, transform_indices = @transform_6, window_bounds = array<i64: 1, 128>}, {transform_indices = @transform_7, window_bounds = array<i64: 8, 128>}]} {
    %c0 = arith.constant 0 : index
    %c0_0 = arith.constant 0 : index
    %0 = vector.load %arg1[%c0, %c0_0] : memref<8x64xf32, #tpu.memory_space<vmem>>, vector<8x64xf32>
    %c0_1 = arith.constant 0 : index
    %c0_2 = arith.constant 0 : index
    %1 = vector.load %arg2[%c0_1, %c0_2] : memref<64x128xf32, #tpu.memory_space<vmem>>, vector<64x128xf32>
    %cst = arith.constant dense<0.000000e+00> : vector<8x128xf32>
    %2 = tpu.matmul %0, %1, %cst {dimension_numbers = #tpu.dot_dimension_numbers<[1], [0], [0], [1], [0, 0, 1, 1], [], []>} : vector<8x64xf32>, vector<64x128xf32>, vector<8x128xf32> -> vector<8x128xf32>
    %c0_3 = arith.constant 0 : index
    %c0_4 = arith.constant 0 : index
    %3 = vector.load %arg3[%c0_3, %c0_4] : memref<1x128xf32, #tpu.memory_space<vmem>>, vector<1x128xf32>
    %4 = vector.broadcast %3 : vector<1x128xf32> to vector<8x128xf32>
    %5 = arith.addf %2, %4 : vector<8x128xf32>
    %cst_5 = arith.constant 0.000000e+00 : f32
    %6 = vector.broadcast %cst_5 : f32 to vector<8x128xf32>
    %7 = arith.cmpf ogt, %5, %6 : vector<8x128xf32>
    %cst_6 = arith.constant 2.000000e-01 : f32
    %8 = vector.broadcast %cst_6 : f32 to vector<8x128xf32>
    %9 = arith.mulf %8, %5 : vector<8x128xf32>
    %10 = arith.select %7, %5, %9 : vector<8x128xi1>, vector<8x128xf32>
    %c0_7 = arith.constant 0 : index
    %c0_8 = arith.constant 0 : index
    %11 = vector.load %arg4[%c0_7, %c0_8] : memref<128x128xf32, #tpu.memory_space<vmem>>, vector<128x128xf32>
    %cst_9 = arith.constant dense<0.000000e+00> : vector<8x128xf32>
    %12 = tpu.matmul %10, %11, %cst_9 {dimension_numbers = #tpu.dot_dimension_numbers<[1], [0], [0], [1], [0, 0, 1, 1], [], []>} : vector<8x128xf32>, vector<128x128xf32>, vector<8x128xf32> -> vector<8x128xf32>
    %c0_10 = arith.constant 0 : index
    %c0_11 = arith.constant 0 : index
    %13 = vector.load %arg5[%c0_10, %c0_11] : memref<1x128xf32, #tpu.memory_space<vmem>>, vector<1x128xf32>
    %14 = vector.broadcast %13 : vector<1x128xf32> to vector<8x128xf32>
    %15 = arith.addf %12, %14 : vector<8x128xf32>
    %cst_12 = arith.constant 0.000000e+00 : f32
    %16 = vector.broadcast %cst_12 : f32 to vector<8x128xf32>
    %17 = arith.cmpf ogt, %15, %16 : vector<8x128xf32>
    %cst_13 = arith.constant 2.000000e-01 : f32
    %18 = vector.broadcast %cst_13 : f32 to vector<8x128xf32>
    %19 = arith.mulf %18, %15 : vector<8x128xf32>
    %20 = arith.select %17, %15, %19 : vector<8x128xi1>, vector<8x128xf32>
    %c0_14 = arith.constant 0 : index
    %c0_15 = arith.constant 0 : index
    %21 = vector.load %arg6[%c0_14, %c0_15] : memref<128x128xf32, #tpu.memory_space<vmem>>, vector<128x128xf32>
    %cst_16 = arith.constant dense<0.000000e+00> : vector<8x128xf32>
    %22 = tpu.matmul %20, %21, %cst_16 {dimension_numbers = #tpu.dot_dimension_numbers<[1], [0], [0], [1], [0, 0, 1, 1], [], []>} : vector<8x128xf32>, vector<128x128xf32>, vector<8x128xf32> -> vector<8x128xf32>
    %c0_17 = arith.constant 0 : index
    %c0_18 = arith.constant 0 : index
    %23 = vector.load %arg7[%c0_17, %c0_18] : memref<1x128xf32, #tpu.memory_space<vmem>>, vector<1x128xf32>
    %24 = vector.broadcast %23 : vector<1x128xf32> to vector<8x128xf32>
    %25 = arith.addf %22, %24 : vector<8x128xf32>
    %c0_19 = arith.constant 0 : index
    %c0_20 = arith.constant 0 : index
    %26 = vector.load %arg8[%c0_19, %c0_20] : memref<8x128xf32, #tpu.memory_space<vmem>>, vector<8x128xf32>
    tpu.vector_store %arg8[%c0_19, %c0_20], %25 {strides = array<i32>} : memref<8x128xf32, #tpu.memory_space<vmem>>, vector<8x128xf32>,
    return
  }
  func.func @transform_0(%arg0: i32) -> (i32, i32) {
    %c0_i32 = arith.constant 0 : i32
    %c0_i32_0 = arith.constant 0 : i32
    return %arg0, %c0_i32 : i32, i32
  }
  func.func @transform_1(%arg0: i32) -> (i32, i32) {
    %c0_i32 = arith.constant 0 : i32
    %c0_i32_0 = arith.constant 0 : i32
    %c0_i32_1 = arith.constant 0 : i32
    return %c0_i32, %c0_i32_0 : i32, i32
  }
  func.func @transform_2(%arg0: i32) -> (i32, i32) {
    %c0_i32 = arith.constant 0 : i32
    %c0_i32_0 = arith.constant 0 : i32
    %c0_i32_1 = arith.constant 0 : i32
    return %c0_i32, %c0_i32_0 : i32, i32
  }
  func.func @transform_3(%arg0: i32) -> (i32, i32) {
    %c0_i32 = arith.constant 0 : i32
    %c0_i32_0 = arith.constant 0 : i32
    %c0_i32_1 = arith.constant 0 : i32
    return %c0_i32, %c0_i32_0 : i32, i32
  }
  func.func @transform_4(%arg0: i32) -> (i32, i32) {
    %c0_i32 = arith.constant 0 : i32
    %c0_i32_0 = arith.constant 0 : i32
    %c0_i32_1 = arith.constant 0 : i32
    return %c0_i32, %c0_i32_0 : i32, i32
  }
  func.func @transform_5(%arg0: i32) -> (i32, i32) {
    %c0_i32 = arith.constant 0 : i32
    %c0_i32_0 = arith.constant 0 : i32
    %c0_i32_1 = arith.constant 0 : i32
    return %c0_i32, %c0_i32_0 : i32, i32
  }
  func.func @transform_6(%arg0: i32) -> (i32, i32) {
    %c0_i32 = arith.constant 0 : i32
    %c0_i32_0 = arith.constant 0 : i32
    %c0_i32_1 = arith.constant 0 : i32
    return %c0_i32, %c0_i32_0 : i32, i32
  }
  func.func @transform_7(%arg0: i32) -> (i32, i32) {
    %c0_i32 = arith.constant 0 : i32
    %c0_i32_0 = arith.constant 0 : i32
    return %arg0, %c0_i32 : i32, i32
  }
}

</mosaic_0001>

<bundles_post_ra>
// kernel: tpu_custom_call.1
= control target key start
LH: loop header
LB: loop body
LE: loop exit
PB: predicated region body
PF: predicated region fallthrough
CT: control target
= control target key end

     0   :  { %12 = vsyncpa [#allocation3], 0  ;;  %s876_s0 = inlined_call_operand.hbm [shape: f32[2,64], index: 0, kind: input, shape index: {}]   ;;  %s877_s1 = inlined_call_operand.hbm [shape: f32[64,128], index: 1, kind: input, shape index: {}]   ;;  %s878_s2 = inlined_call_operand.vmem [shape: f32[1,128], index: 2, kind: input, shape index: {}]   ;;  %s879_s3 = inlined_call_operand.hbm [shape: f32[128,128], index: 3, kind: input, shape index: {}]   ;;  %s880_s4 = inlined_call_operand.vmem [shape: f32[1,128], index: 4, kind: input, shape index: {}]   ;;  %s881_s5 = inlined_call_operand.hbm [shape: f32[128,128], index: 5, kind: input, shape index: {}]   ;;  %s882_s6 = inlined_call_operand.vmem [shape: f32[1,128], index: 6, kind: input, shape index: {}]   ;;  %s883_s7 = inlined_call_operand.hbm [shape: f32[2,128], index: 7, kind: output, shape index: {}]  }
   0x1   :  { %13 = vsyncpa [#allocation6], 0 }
   0x2   :  { %14 = vsyncpa [#allocation9], 0 }
   0x3   :  { %15 = vsyncpa [#allocation4], 0 }
   0x4   :  { %20 = vsyncadd [#allocation3], 96  ;;  %s710_s24 = smov [#allocation5]   ;;  %s592_s28 = scalar_lea.hbm %s877_s1, 1024 }
   0x5   :  { %s33_s25 = sshll.u32 %s710_s24, 4  ;;  %p593_p0 = scmp.ne.s32.totalorder %s877_s1, %s592_s28  ;;  %s34_s25 = int_to_ptr.vmem [resolvable:$true] %s33_s25 }
   0x6   :  { %p596_p1 = scmp.lt.u32.totalorder %s592_s28, %s877_s1 }
   0x8   :  { %p598_p2 = pnand %p596_p1, %p593_p0 }
   0xa   :  { %601 = shalt.err (!%p598_p2)
}
   0xb   :  { %s602_s10 = scalar_lea.vmem %s34_s25, 1024  ;;  %p607_p4 = scmp.lt.s32.totalorder %s34_s25, %s34_s25 }
   0xc   :  { %p603_p3 = scmp.ne.s32.totalorder %s34_s25, %s602_s10  ;;  %p608_p5 = scmp.lt.s32.totalorder %s602_s10, %s602_s10 }
   0xe   :  { %p609_p6 = por %p608_p5, %p607_p4 }
  0x10   :  { %p610_p7 = pnand %p609_p6, %p603_p3 }
  0x12   :  { %613 = shalt.err (!%p610_p7)
}
  0x13   :  { %s711_s11 = smov 128   ;;  %s712_s12 = smov 8  }
  0x14   :  { %39 = dma.hbm_to_vmem [thread:$0]  %s877_s1, 1024, %s34_s25, [#allocation6], %s711_s11, %s711_s11, %s712_s12  }
  0x15   :  { %s713_s15 = smov [#allocation2]   ;;  %s614_s19 = scalar_lea.hbm %s876_s0, 32 }
  0x16   :  { %s21_s16 = sshll.u32 %s713_s15, 4  ;;  %p615_p8 = scmp.ne.s32.totalorder %s876_s0, %s614_s19  ;;  %s22_s16 = int_to_ptr.vmem [resolvable:$true] %s21_s16 }
  0x17   :  { %p618_p9 = scmp.lt.u32.totalorder %s614_s19, %s876_s0 }
  0x19   :  { %p620_p10 = pnand %p618_p9, %p615_p8 }
  0x1b   :  { %623 = shalt.err (!%p620_p10)
}
  0x1c   :  { %s624_s24 = scalar_lea.vmem %s22_s16, 32  ;;  %s628_s1 = scalar_lea.vmem %s22_s16, 128 }
  0x1d   :  { %p625_p11 = scmp.ne.s32.totalorder %s22_s16, %s624_s24  ;;  %p629_p12 = scmp.lt.s32.totalorder %s22_s16, %s22_s16 }
  0x1e   :  { %p630_p13 = scmp.lt.s32.totalorder %s628_s1, %s624_s24 }
  0x20   :  { %p631_p0 = por %p630_p13, %p629_p12 }
  0x22   :  { %p632_p1 = pnand %p631_p0, %p625_p11 }
  0x24   :  { %635 = shalt.err (!%p632_p1)
}
  0x25   :  { %s714_s25 = smov 32   ;;  %s715_s26 = smov 2  }
  0x26   :  { %27 = dma.hbm_to_vmem [thread:$0]  %s876_s0, 32, %s22_s16, [#allocation3], %s714_s25, %s714_s25, %s715_s26  }
  0x27   :  { %s716_s29 = smov [#allocation7]   ;;  %s717_s8 = smov [#allocation8]  }
  0x28   :  { %s47_s30 = sshll.u32 %s716_s29, 4  ;;  %s61_s9 = sshll.u32 %s717_s8, 4  ;;  %s48_s30 = int_to_ptr.vmem [resolvable:$true] %s47_s30  ;;  %s792_s9 = int_to_ptr.vmem [resolvable:$true] %s61_s9 }
  0x29   :  { %s636_s14 = scalar_lea.hbm %s879_s3, 2048 }
  0x2a   :  { %p637_p2 = scmp.ne.s32.totalorder %s879_s3, %s636_s14  ;;  %p640_p3 = scmp.lt.u32.totalorder %s636_s14, %s879_s3 }
  0x2c   :  { %p642_p4 = pnand %p640_p3, %p637_p2 }
  0x2e   :  { %645 = shalt.err (!%p642_p4)
}
  0x2f   :  { %s646_s0 = scalar_lea.vmem %s48_s30, 2048  ;;  %p651_p6 = scmp.lt.s32.totalorder %s48_s30, %s48_s30 }
  0x30   :  { %p647_p5 = scmp.ne.s32.totalorder %s48_s30, %s646_s0  ;;  %p652_p7 = scmp.lt.s32.totalorder %s646_s0, %s646_s0 }
  0x32   :  { %p653_p8 = por %p652_p7, %p651_p6 }
  0x34   :  { %p654_p9 = pnand %p653_p8, %p647_p5 }
  0x36   :  { %657 = shalt.err (!%p654_p9)
}
  0x37   :  { %53 = dma.hbm_to_vmem [thread:$0]  %s879_s3, 2048, %s48_s30, [#allocation6], %s711_s11, %s711_s11, %s712_s12  }
  0x38   :  { %s658_s23 = scalar_lea.hbm %s881_s5, 2048 }
  0x39   :  { %p659_p10 = scmp.ne.s32.totalorder %s881_s5, %s658_s23  ;;  %p662_p11 = scmp.lt.u32.totalorder %s658_s23, %s881_s5 }
  0x3b   :  { %p664_p12 = pnand %p662_p11, %p659_p10 }
  0x3d   :  { %667 = shalt.err (!%p664_p12)
}
  0x3e   :  { %s668_s29 = scalar_lea.vmem %s792_s9, 2048  ;;  %p673_p0 = scmp.lt.s32.totalorder %s792_s9, %s792_s9 }
  0x3f   :  { %p669_p13 = scmp.ne.s32.totalorder %s792_s9, %s668_s29  ;;  %p674_p1 = scmp.lt.s32.totalorder %s668_s29, %s668_s29 }
  0x41   :  { %p675_p2 = por %p674_p1, %p673_p0 }
  0x43   :  { %p676_p3 = pnand %p675_p2, %p669_p13 }
  0x45   :  { %679 = shalt.err (!%p676_p3)
}
  0x46   :  { %67 = dma.hbm_to_vmem [thread:$0]  %s881_s5, 2048, %s792_s9, [#allocation9], %s711_s11, %s711_s11, %s712_s12  }
  0x47   :  { %702 = dma.done.wait [#allocation3], 128  }
  0x48   :  { %703 = vsyncadd [#allocation3], 4294967168 }
  0x49   :  { %704 = dma.done.wait [#allocation6], 3072  }
  0x4a   :  { %705 = vsyncadd [#allocation6], 4294964224 }
  0x4b   :  { %706 = dma.done.wait [#allocation9], 2048  }
  0x4c   :  { %707 = vsyncadd [#allocation9], 4294965248  ;;  %v718_v0 = vmov 0.0|0.0   ;;  %vm719_vm0 = vmmov 0   ;;  %v720_v1 = vmov 0.0   ;;  %v83_v2 = vld [vmem:[#allocation5] sm:$0xff] }
  0x4d   :  { %520 = vmatprep.subr.bf16.mxu0 %v718_v0  ;;  %447 = vmatprep.mubr.msk.f32.mxu0 %vm719_vm0, %v720_v1  ;;  %v84_v3 = vld [vmem:[#allocation5 + $0x8] sm:$0xff]  ;;  %v85_v4 = vld [vmem:[#allocation5 + $0x10] sm:$0xff]  ;;  %v86_v6 = vld [vmem:[#allocation5 + $0x18] sm:$0xff]  ;;  %vm98_vm1 = vcmask 523264  }
  0x4e   :  { %532 = vmatprep.subr.bf16.mxu1 %v718_v0  ;;  %482 = vmatprep.mubr.msk.f32.mxu1 %vm719_vm0, %v720_v1  ;;  %v521_v5 = vpack.c.bf16 %v84_v3, %v83_v2  ;;  %v524_v7 = vpack.c.bf16 %v86_v6, %v85_v4  ;;  %v175_v8 = vld [vmem:[#allocation7] sm:$0xff]  ;;  %v176_v9 = vld [vmem:[#allocation7 + $0x8] sm:$0xff]  ;;  %v177_v10 = vld [vmem:[#allocation7 + $0x10] sm:$0xff] }
  0x4f   :  { %v87_v11 = vld [vmem:[#allocation5 + $0x20] sm:$0xff]  ;;  %v88_v12 = vld [vmem:[#allocation5 + $0x28] sm:$0xff]  ;;  %v533_v13 = vpack.c.bf16 %v176_v9, %v175_v8  ;;  %v178_v14 = vld [vmem:[#allocation7 + $0x18] sm:$0xff] }
  0x50   :  { %522 = vmatpush3.bf16.msra.mxu0 %v521_v5  ;;  %v536_v15 = vpack.c.bf16 %v178_v14, %v177_v10  ;;  %v527_v16 = vpack.c.bf16 %v88_v12, %v87_v11  ;;  %v179_v17 = vld [vmem:[#allocation7 + $0x20] sm:$0xff]  ;;  %v180_v18 = vld [vmem:[#allocation7 + $0x28] sm:$0xff]  ;;  %v89_v19 = vld [vmem:[#allocation5 + $0x30] sm:$0xff] }
  0x51   :  { %523 = vmatprep.subr.bf16.mxu0 %v718_v0  ;;  %534 = vmatpush3.bf16.msra.mxu1 %v533_v13  ;;  %v90_v20 = vld [vmem:[#allocation5 + $0x38] sm:$0xff]  ;;  %v539_v21 = vpack.c.bf16 %v180_v18, %v179_v17  ;;  %v181_v23 = vld [vmem:[#allocation7 + $0x30] sm:$0xff]  ;;  %v183_v27 = vld [vmem:[#allocation7 + $0x40] sm:$0xff] }
  0x52   :  { %535 = vmatprep.subr.bf16.mxu1 %v718_v0  ;;  %v530_v22 = vpack.c.bf16 %v90_v20, %v89_v19  ;;  %v182_v24 = vld [vmem:[#allocation7 + $0x38] sm:$0xff]  ;;  %v184_v28 = vld [vmem:[#allocation7 + $0x48] sm:$0xff]  ;;  %v185_v30 = vld [vmem:[#allocation7 + $0x50] sm:$0xff] }
  0x53   :  { %v542_v25 = vpack.c.bf16 %v182_v24, %v181_v23  ;;  %v82_v26 = vld [vmem:[#allocation2] sm:$0xff]  ;;  %v545_v29 = vpack.c.bf16 %v184_v28, %v183_v27  ;;  %v187_v33 = vld [vmem:[#allocation7 + $0x60] sm:$0xff]  ;;  %v188_v34 = vld [vmem:[#allocation7 + $0x68] sm:$0xff] }
  0x54   :  { %525 = vmatpush3.bf16.msra.mxu0 %v524_v7  ;;  %v186_v31 = vld [vmem:[#allocation7 + $0x58] sm:$0xff]  ;;  %v551_v35 = vpack.c.bf16 %v188_v34, %v187_v33  ;;  %v189_v36 = vld [vmem:[#allocation7 + $0x70] sm:$0xff]  ;;  %v271_v39 = vld [vmem:[#allocation8] sm:$0xff] }
  0x55   :  { %526 = vmatprep.subr.bf16.mxu0 %v718_v0  ;;  %537 = vmatpush3.bf16.msra.mxu1 %v536_v15  ;;  %v548_v32 = vpack.c.bf16 %v186_v31, %v185_v30  ;;  %v190_v37 = vld [vmem:[#allocation7 + $0x78] sm:$0xff]  ;;  %v272_v40 = vld [vmem:[#allocation8 + $0x8] sm:$0xff]  ;;  %v273_v41 = vld [vmem:[#allocation8 + $0x10] sm:$0xff] }
  0x56   :  { %538 = vmatprep.subr.bf16.mxu1 %v718_v0  ;;  %v554_v38 = vpack.c.bf16 %v190_v37, %v189_v36  ;;  %v557_v42 = vpack.c.bf16 %v272_v40, %v271_v39  ;;  %v274_v43 = vld [vmem:[#allocation8 + $0x18] sm:$0xff]  ;;  %v275_v45 = vld [vmem:[#allocation8 + $0x20] sm:$0xff]  ;;  %v276_v46 = vld [vmem:[#allocation8 + $0x28] sm:$0xff] }
  0x57   :  { %v560_v44 = vpack.c.bf16 %v274_v43, %v273_v41  ;;  %v563_v47 = vpack.c.bf16 %v276_v46, %v275_v45  ;;  %v277_v48 = vld [vmem:[#allocation8 + $0x30] sm:$0xff]  ;;  %v278_v49 = vld [vmem:[#allocation8 + $0x38] sm:$0xff]  ;;  %v279_v51 = vld [vmem:[#allocation8 + $0x40] sm:$0xff] }
  0x58   :  { %528 = vmatpush3.bf16.msra.mxu0 %v527_v16  ;;  %v566_v50 = vpack.c.bf16 %v278_v49, %v277_v48  ;;  %v280_v52 = vld [vmem:[#allocation8 + $0x48] sm:$0xff]  ;;  %v281_v54 = vld [vmem:[#allocation8 + $0x50] sm:$0xff]  ;;  %v282_v55 = vld [vmem:[#allocation8 + $0x58] sm:$0xff] }
  0x59   :  { %529 = vmatprep.subr.bf16.mxu0 %v718_v0  ;;  %540 = vmatpush3.bf16.msra.mxu1 %v539_v21  ;;  %v569_v53 = vpack.c.bf16 %v280_v52, %v279_v51  ;;  %v572_v56 = vpack.c.bf16 %v282_v55, %v281_v54  ;;  %v283_v57 = vld [vmem:[#allocation8 + $0x60] sm:$0xff]  ;;  %v284_v58 = vld [vmem:[#allocation8 + $0x68] sm:$0xff]  ;;  %v384_v60 = vld [vmem:[%s878_s2] ss:$0 sm:$0xff] }
  0x5a   :  { %541 = vmatprep.subr.bf16.mxu1 %v718_v0  ;;  %v575_v59 = vpack.c.bf16 %v284_v58, %v283_v57  ;;  %v285_v3 = vld [vmem:[#allocation8 + $0x70] sm:$0xff]  ;;  %v286_v4 = vld [vmem:[#allocation8 + $0x78] sm:$0xff] }
  0x5b   :  { %v578_v5 = vpack.c.bf16 %v286_v4, %v285_v3  ;;  %v386_v6 = vld [vmem:[%s880_s4] ss:$0 sm:$0xff] }
  0x5c   :  { %531 = vmatpush3.bf16.msra.mxu0 %v530_v22  ;;  %v387_v11 = vld [vmem:[%s882_s6] ss:$0 sm:$0xff] }
  0x5d   :  { %556 = vmatprep.subr.bf16.mxu0 %v718_v0  ;;  %543 = vmatpush3.bf16.msra.mxu1 %v542_v25 }
  0x5e   :  { %544 = vmatprep.subr.bf16.mxu1 %v718_v0 }
  0x5f   :  { %448 = vmatmul.mubr.msk.f32.vlgmr.msra.gmra.mrb[0].mxu0 %vm98_vm1, %v82_v26 }
  0x60   :  { %517 = vmatprep.mubr.msk.f32.mxu0 %vm719_vm0, %v720_v1  ;;  %558 = vmatpush3.bf16.msra.mxu0 %v557_v42 }
  0x61   :  { %546 = vmatpush3.bf16.msra.mxu1 %v545_v29  ;;  %559 = vmatprep.subr.bf16.mxu0 %v718_v0 }
  0x62   :  { %547 = vmatprep.subr.bf16.mxu1 %v718_v0 }
  0x64   :  { %561 = vmatpush3.bf16.msra.mxu0 %v560_v44 }
  0x65   :  { %549 = vmatpush3.bf16.msra.mxu1 %v548_v32  ;;  %562 = vmatprep.subr.bf16.mxu0 %v718_v0 }
  0x66   :  { %550 = vmatprep.subr.bf16.mxu1 %v718_v0 }
  0x68   :  { %564 = vmatpush3.bf16.msra.mxu0 %v563_v47 }
  0x69   :  { %552 = vmatpush3.bf16.msra.mxu1 %v551_v35  ;;  %565 = vmatprep.subr.bf16.mxu0 %v718_v0 }
  0x6a   :  { %553 = vmatprep.subr.bf16.mxu1 %v718_v0 }
  0x6c   :  { %567 = vmatpush3.bf16.msra.mxu0 %v566_v50 }
  0x6d   :  { %555 = vmatpush3.bf16.msra.mxu1 %v554_v38  ;;  %568 = vmatprep.subr.bf16.mxu0 %v718_v0 }
  0x70   :  { %570 = vmatpush3.bf16.msra.mxu0 %v569_v53 }
  0x71   :  { %571 = vmatprep.subr.bf16.mxu0 %v718_v0 }
  0x74   :  { %573 = vmatpush3.bf16.msra.mxu0 %v572_v56 }
  0x75   :  { %574 = vmatprep.subr.bf16.mxu0 %v718_v0 }
  0x78   :  { %576 = vmatpush3.bf16.msra.mxu0 %v575_v59 }
  0x79   :  { %577 = vmatprep.subr.bf16.mxu0 %v718_v0 }
  0x7c   :  { %579 = vmatpush3.bf16.msra.mxu0 %v578_v5 }
 0x132   :  { %v168_v61 = vpop.f32.mrb[0].mxu0 }
 0x133   :  { %v169_v62 = vadd.f32 %v384_v60, %v168_v61  ;;  %v449_v63 = vpop.f32.mrb[1].mxu0 }
 0x135   :  { %v173_v1 = vmul.f32 0.2, %v169_v62  ;;  %vm172_vm2 = vcmp.gt.f32.partialorder %v169_v62, 0.0 }
 0x137   :  { %v174_v2 = vsel %vm172_vm2, %v169_v62, %v173_v1 }
 0x138   :  { %483 = vmatmul.mubr.f32.vlgmr.msra.gmra.mrb[0].mxu1 %v174_v2 }
 0x20b   :  { %v264_v0 = vpop.f32.mrb[0].mxu1 }
 0x20c   :  { %v265_v7 = vadd.f32 %v386_v6, %v264_v0  ;;  %v484_v8 = vpop.f32.mrb[1].mxu1 }
 0x20e   :  { %vm268_vm3 = vcmp.gt.f32.partialorder %v265_v7, 0.0  ;;  %v269_v9 = vmul.f32 0.2, %v265_v7 }
 0x210   :  { %v270_v10 = vsel %vm268_vm3, %v265_v7, %v269_v9 }
 0x211   :  { %518 = vmatmul.mubr.f32.vlgmr.msra.gmra.mrb[2].mxu0 %v270_v10 }
 0x2e4   :  { %v360_v12 = vpop.f32.mrb[2].mxu0 }
 0x2e5   :  { %v361_v13 = vadd.f32 %v387_v11, %v360_v12  ;;  %v519_v14 = vpop.f32.mrb[3].mxu0 }
 0x2e7   :  { %364 = vst [vmem:[#allocation10] sm:$0xff] %v361_v13 }
 0x2e8   :  { %369 = vsyncadd [#allocation4], 96  ;;  %s721_s10 = smov [#allocation10]  }
 0x2e9   :  { %s370_s13 = sshll.u32 %s721_s10, 4  ;;  %s371_s13 = int_to_ptr.vmem [resolvable:$true] %s370_s13 }
 0x2ea   :  { %s680_s4 = scalar_lea.vmem %s371_s13, 32  ;;  %s684_s14 = scalar_lea.vmem %s371_s13, 128 }
 0x2eb   :  { %p681_p4 = scmp.ne.s32.totalorder %s371_s13, %s680_s4  ;;  %p685_p5 = scmp.lt.s32.totalorder %s371_s13, %s371_s13 }
 0x2ec   :  { %p686_p6 = scmp.lt.s32.totalorder %s684_s14, %s680_s4 }
 0x2ee   :  { %p687_p7 = por %p686_p6, %p685_p5 }
 0x2f0   :  { %p688_p8 = pnand %p687_p7, %p681_p4 }
 0x2f2   :  { %691 = shalt.err (!%p688_p8)
}
 0x2f3   :  { %s692_s6 = scalar_lea.hbm %s883_s7, 32 }
 0x2f4   :  { %p693_p9 = scmp.ne.s32.totalorder %s883_s7, %s692_s6  ;;  %p696_p10 = scmp.lt.u32.totalorder %s692_s6, %s883_s7 }
 0x2f6   :  { %p698_p11 = pnand %p696_p10, %p693_p9 }
 0x2f8   :  { %701 = shalt.err (!%p698_p11)
}
 0x2f9   :  { %376 = dma.vmem_to_hbm [thread:$0]  %s371_s13, 32, %s883_s7, [#allocation4], %s714_s25, %s714_s25, %s715_s26  }
 0x2fa   :  { %708 = dma.done.wait [#allocation4], 128  }
 0x2fb   :  { %709 = vsyncadd [#allocation4], 4294967168 }
 0x2fc   :  { %380 = vsyncpa [#allocation3], 1 }
 0x2fd   :  { %381 = vsyncpa [#allocation6], 1 }
 0x2fe   :  { %382 = vsyncpa [#allocation9], 1 }
 0x2ff   :  { %383 = vsyncpa [#allocation4], 1 }

</bundles_post_ra>
